<compile_context>
chip_gen: v7x
topology: tpu7x:2x2x1
jax: 0.10.0
libtpu: 0.0.40
codegen_flags: <defaults>
</compile_context>

<pallas_src>
import jax
import jax.numpy as jnp
from jax.experimental import pallas as pl
from jax.experimental.pallas import tpu as pltpu


def _round_up(x, m):
    return (x + m - 1) // m * m


def _vmem_capacity_bytes():
    """Physical VMEM per TensorCore; conservative fallback if the query fails."""
    try:
        return int(pltpu.get_tpu_info().vmem_capacity_bytes)
    except Exception:
        return 64 << 20            # v7x is the smallest (64 MiB) -> safe everywhere


def _block_bytes_est(T, P, Wo, K, Ct):
    """VMEM footprint estimate of one grid step (double-buffered operands + scratch)."""
    m = T * Wo
    x_blk = T * P * _round_up(Wo, 16) * _round_up(K, 128) * 2       # bf16
    o_blk = _round_up(m, 16) * _round_up(Ct, 128) * 2               # bf16
    w_blk = _round_up(P * K, 16) * _round_up(Ct, 128) * 2           # bf16
    b_blk = 8 * _round_up(Ct, 128) * 4                              # f32
    xs_scr = _round_up(m, 16) * _round_up(P * K, 128) * 2           # bf16 scratch
    return 2 * (x_blk + o_blk + w_blk + b_blk) + xs_scr


def _pick_row_tile(R, P, Wo, K, Ct, budget_bytes, target_m=256, max_t_unroll=32):
    """Pick T (#output rows per grid step), T | R, preferring (in order):
       fits the VMEM budget > small in-kernel copy unroll > >=2 steps on the
       leading (megacore) grid axis > M = T*Wo close to target_m.
       Hard constraint: (T*Wo) % 8 == 0 or T == R, so the flattened out block
       (T*Wo, Ct) keeps an 8-aligned (or full-extent) sublane dim."""
    cands = []
    for T in range(1, R + 1):
        if R % T:
            continue
        if (T * Wo) % 8 != 0 and T != R:
            continue
        score = (
            _block_bytes_est(T, P, Wo, K, Ct) <= budget_bytes,
            T <= max_t_unroll,
            (R // T) >= 2,
            -abs(T * Wo - min(target_m, R * Wo)),
        )
        cands.append((score, T))
    return max(cands)[1]


# ------------------------------ Pallas kernel --------------------------------

def _patch_conv_kernel(x_ref, w_ref, b_ref, o_ref, xs_ref):
    """One (row-tile, Cout-tile) grid step of Conv(kernel=P, stride=P)+bias+ReLU.

    x_ref : (T, P, Wo, K) bf16   activation rows, K = P*Cin (patch-row-major view)
    w_ref : (P*K, Ct)     bf16   resident weight slab, rows ordered (ph, pw, cin)
    b_ref : (1, Ct)       f32
    o_ref : (T*Wo, Ct)    bf16   flattened output rows (single lane-dense store)
    xs_ref: (T*Wo, P*K)   bf16   VMEM scratch holding this step's im2col slab
    """
    T, P, Wo, K = x_ref.shape
    # Assemble the (M, P*K) lhs once per step.  Pure VMEM traffic (~one extra
    # pass over the x block), hidden under the HBM pipeline; lets the MXU see a
    # single dot with M = T*Wo instead of T tiny M = Wo dots.
    for t in range(T):
        for ph in range(P):
            xs_ref[pl.ds(t * Wo, Wo), pl.ds(ph * K, K)] = x_ref[t, ph, :, :]
    acc = jnp.dot(xs_ref[...], w_ref[...], preferred_element_type=jnp.float32)
    o_ref[...] = jnp.maximum(acc + b_ref[...], 0.0).astype(o_ref.dtype)


# ------------------------------- wrappers -------------------------------------

def patch_conv_relu(x_nhwc, w2d, b, patch):
    """Conv2d(kernel=patch, stride=patch) + bias + ReLU, NHWC in / NHWC out.

    x_nhwc: (N, H, W, Cin) (cast to bf16); w2d: (patch*patch*Cin, Cout) bf16
    (rows ordered (ph, pw, cin)); b: (1, Cout) f32.
    Returns (N, H//patch, W//patch, Cout) bf16.
    """
    x_nhwc = x_nhwc.astype(jnp.bfloat16)
    N, H, W, Cin = x_nhwc.shape
    assert H % patch == 0 and W % patch == 0, (
        "TODO(synk): pad NestedTensor inputs so H, W are divisible by 32")
    Ho, Wo = H // patch, W // patch
    K = patch * Cin
    Cout = w2d.shape[-1]
    assert w2d.shape == (patch * K, Cout)

    R = N * Ho                     # output rows
    M_total = R * Wo               # output pixels
    # Free row-major view: NO HBM copy, no im2col materialisation in HBM.
    xr = x_nhwc.reshape(R, patch, Wo, K)

    # Lane-dense Cout tiling; Ct<=256 keeps the f32 dot result small.
    Ct = min(Cout, 256)
    assert Cout % Ct == 0

    cap = _vmem_capacity_bytes()
    budget = int(0.4 * cap)        # tile-picking budget (headroom for compiler scratch)
    T = _pick_row_tile(R, patch, Wo, K, Ct, budget)
    grid = (R // T, Cout // Ct)    # row tiles lead -> x is streamed exactly once

    need = _block_bytes_est(T, patch, Wo, K, Ct)
    vmem_limit = int(min(max(2 * need, 16 << 20), int(0.6 * cap)))   # ~38MiB v7x / ~76MiB v5e,v6e
    vmem_limit = max(vmem_limit, min(need + (4 << 20), int(0.9 * cap)))

    flops = 2 * M_total * (patch * K) * Cout
    bytes_accessed = (xr.size + w2d.size + M_total * Cout) * 2 + b.size * 4

    out = pl.pallas_call(
        _patch_conv_kernel,
        grid=grid,
        in_specs=[
            pl.BlockSpec((T, patch, Wo, K), lambda i, j: (i, 0, 0, 0)),  # same block over j
            pl.BlockSpec((patch * K, Ct), lambda i, j: (0, j)),          # resident over i
            pl.BlockSpec((1, Ct), lambda i, j: (0, j)),
        ],
        out_specs=pl.BlockSpec((T * Wo, Ct), lambda i, j: (i, j)),
        out_shape=jax.ShapeDtypeStruct((M_total, Cout), jnp.bfloat16),
        scratch_shapes=[pltpu.VMEM((T * Wo, patch * K), jnp.bfloat16)],
        compiler_params=pltpu.CompilerParams(
            dimension_semantics=("parallel", "parallel"),
            vmem_limit_bytes=vmem_limit),
        cost_estimate=pl.CostEstimate(flops=int(flops), transcendentals=0,
                                      bytes_accessed=int(bytes_accessed)),
    )(xr, w2d, b)
    return out.reshape(N, Ho, Wo, Cout)


def interpolate_masks_nearest(mask_bool, sizes):
    """F.interpolate(m[None].float(), size=(h,w)).to(bool)[0] for each (h,w).

    PyTorch 'nearest': src = floor(dst * in / out).  Pure O(h*w) bool gather in
    plain JAX (a Pallas launch + float round-trip only adds overhead for this
    memory-bound glue); all scales come from one mask read."""
    N, H, W = mask_bool.shape
    outs = []
    for (h, w) in sizes:
        rows = (jnp.arange(h) * H) // h
        cols = (jnp.arange(w) * W) // w
        outs.append(mask_bool[:, rows[:, None], cols[None, :]])
    return outs


class BackboneBasePallas:
    """JAX/Pallas stand-in for Deformable-DETR BackboneBase (forward only).

    TODO(synk): I/O is NHWC + bf16 (per perf review: drops two full HBM
    transpose passes and halves activation bandwidth); the PyTorch module uses
    NCHW f32 — transpose/cast at the boundary only if a consumer insists.
    """

    def __init__(self, train_backbone=True, return_interm_layers=True,
                 key=jax.random.PRNGKey(0)):
        # train_backbone only toggles requires_grad in PyTorch; no forward effect.
        if return_interm_layers:
            self.return_layers = ["0", "1", "2"]
            self.strides = [8, 16, 32]
            self.num_channels = [128, 256, 512]  # lane-dense stand-in for [512,1024,2048]
        else:
            self.return_layers = ["0"]
            self.strides = [32]
            self.num_channels = [512]
        self.return_interm_layers = return_interm_layers

        cin, stem_c = 3, 128
        stage_cs = [128, 256, 512]
        # stem: stride-4 patch conv; then three stride-2 stages -> strides 8/16/32.
        stage_defs = [(4, cin, stem_c)] + [
            (2, ci, co) for ci, co in zip([stem_c] + stage_cs[:-1], stage_cs)]
        self.params = []
        k = key
        for (p, ci, co) in stage_defs:
            k, kw = jax.random.split(k)
            fan_in = p * p * ci
            w = jax.random.normal(kw, (fan_in, co), jnp.float32) / jnp.sqrt(
                jnp.float32(fan_in))
            # (P*P*Cin, Cout) slab, rows ordered (ph, pw, cin); bf16 for the MXU
            # (f32 accumulation inside the kernel).
            self.params.append((p, w.astype(jnp.bfloat16),
                                jnp.zeros((1, co), jnp.float32)))

    def __call__(self, tensors_nhwc, mask):
        x = tensors_nhwc.astype(jnp.bfloat16)          # NHWC, bf16 end-to-end
        feats = []
        for (p, w2d, b) in self.params:
            x = patch_conv_relu(x, w2d, b, p)
            feats.append(x)
        stage_feats = feats[1:]                        # layer2, layer3, layer4
        selected = stage_feats if self.return_interm_layers else [stage_feats[-1]]

        sizes = [(f.shape[1], f.shape[2]) for f in selected]
        masks = interpolate_masks_nearest(mask, sizes)

        out = {}
        for name, f, m in zip(self.return_layers, selected, masks):
            out[name] = (f, m)                         # NHWC bf16 features + bool mask
        return out


if __name__ == "__main__":
    key = jax.random.PRNGKey(0)
    kx, _ = jax.random.split(key)

    N, H, W, C = 2, 32, 32, 3
    x = jax.random.normal(kx, (N, H, W, C), jnp.float32)   # NHWC input

    # NestedTensor-style padding mask: True where padded (bottom / right strip).
    ii = jnp.arange(H)[:, None]
    jj = jnp.arange(W)[None, :]
    mask = jnp.broadcast_to((ii >= 24) | (jj >= 28), (N, H, W))

    model = BackboneBasePallas(train_backbone=True, return_interm_layers=True)
    out = model(x, mask)
    out = jax.block_until_ready(out)

    # sanity checks on shapes (ResNet-style stride pyramid 8/16/32, NHWC)
    assert out["0"][0].shape == (N, H // 8, W // 8, 128)
    assert out["1"][0].shape == (N, H // 16, W // 16, 256)
    assert out["2"][0].shape == (N, H // 32, W // 32, 512)
    assert out["0"][0].dtype == jnp.bfloat16
    assert out["0"][1].shape == (N, H // 8, W // 8) and out["0"][1].dtype == jnp.bool_
    assert out["2"][1].shape == (N, H // 32, W // 32)

    print("KERNEL_OK")
</pallas_src>

<mosaic_0001>
module attributes {stable_mosaic.version = 11 : i64} {
  func.func @_patch_conv_kernel(%arg0: i32, %arg1: i32, %arg2: memref<8x4x8x12xbf16, #tpu.memory_space<vmem>>, %arg3: memref<48x128xbf16, #tpu.memory_space<vmem>>, %arg4: memref<1x128xf32, #tpu.memory_space<vmem>>, %arg5: memref<64x128xbf16, #tpu.memory_space<vmem>>, %arg6: memref<64x48xbf16, #tpu.memory_space<vmem>>) attributes {dimension_semantics = [#tpu.dimension_semantics<parallel>, #tpu.dimension_semantics<parallel>], iteration_bounds = array<i64: 2, 1>, scalar_prefetch = 0 : i64, scratch_operands = 1 : i64, tpu.core_type = #tpu.core_type<tc>, window_params = [{transform_indices = @transform_0, window_bounds = array<i64: 8, 4, 8, 12>}, {transform_indices = @transform_1, window_bounds = array<i64: 48, 128>}, {transform_indices = @transform_2, window_bounds = array<i64: 1, 128>}, {transform_indices = @transform_3, window_bounds = array<i64: 64, 128>}]} {
    %c0 = arith.constant 0 : index
    %c0_0 = arith.constant 0 : index
    %c0_1 = arith.constant 0 : index
    %c0_2 = arith.constant 0 : index
    %0 = vector.load %arg2[%c0, %c0_0, %c0_1, %c0_2] : memref<8x4x8x12xbf16, #tpu.memory_space<vmem>>, vector<1x1x8x12xbf16>
    %1 = vector.shape_cast %0 : vector<1x1x8x12xbf16> to vector<8x12xbf16>
    %c0_3 = arith.constant 0 : index
    %c0_4 = arith.constant 0 : index
    %2 = vector.load %arg6[%c0_3, %c0_4] : memref<64x48xbf16, #tpu.memory_space<vmem>>, vector<8x12xbf16>
    tpu.vector_store %arg6[%c0_3, %c0_4], %1 {strides = array<i32>} : memref<64x48xbf16, #tpu.memory_space<vmem>>, vector<8x12xbf16>,
    %c0_5 = arith.constant 0 : index
    %c1 = arith.constant 1 : index
    %c0_6 = arith.constant 0 : index
    %c0_7 = arith.constant 0 : index
    %3 = vector.load %arg2[%c0_5, %c1, %c0_6, %c0_7] : memref<8x4x8x12xbf16, #tpu.memory_space<vmem>>, vector<1x1x8x12xbf16>
    %4 = vector.shape_cast %3 : vector<1x1x8x12xbf16> to vector<8x12xbf16>
    %c0_8 = arith.constant 0 : index
    %c12 = arith.constant 12 : index
    %5 = vector.load %arg6[%c0_8, %c12] : memref<64x48xbf16, #tpu.memory_space<vmem>>, vector<8x12xbf16>
    tpu.vector_store %arg6[%c0_8, %c12], %4 {strides = array<i32>} : memref<64x48xbf16, #tpu.memory_space<vmem>>, vector<8x12xbf16>,
    %c0_9 = arith.constant 0 : index
    %c2 = arith.constant 2 : index
    %c0_10 = arith.constant 0 : index
    %c0_11 = arith.constant 0 : index
    %6 = vector.load %arg2[%c0_9, %c2, %c0_10, %c0_11] : memref<8x4x8x12xbf16, #tpu.memory_space<vmem>>, vector<1x1x8x12xbf16>
    %7 = vector.shape_cast %6 : vector<1x1x8x12xbf16> to vector<8x12xbf16>
    %c0_12 = arith.constant 0 : index
    %c24 = arith.constant 24 : index
    %8 = vector.load %arg6[%c0_12, %c24] : memref<64x48xbf16, #tpu.memory_space<vmem>>, vector<8x12xbf16>
    tpu.vector_store %arg6[%c0_12, %c24], %7 {strides = array<i32>} : memref<64x48xbf16, #tpu.memory_space<vmem>>, vector<8x12xbf16>,
    %c0_13 = arith.constant 0 : index
    %c3 = arith.constant 3 : index
    %c0_14 = arith.constant 0 : index
    %c0_15 = arith.constant 0 : index
    %9 = vector.load %arg2[%c0_13, %c3, %c0_14, %c0_15] : memref<8x4x8x12xbf16, #tpu.memory_space<vmem>>, vector<1x1x8x12xbf16>
    %10 = vector.shape_cast %9 : vector<1x1x8x12xbf16> to vector<8x12xbf16>
    %c0_16 = arith.constant 0 : index
    %c36 = arith.constant 36 : index
    %11 = vector.load %arg6[%c0_16, %c36] : memref<64x48xbf16, #tpu.memory_space<vmem>>, vector<8x12xbf16>
    tpu.vector_store %arg6[%c0_16, %c36], %10 {strides = array<i32>} : memref<64x48xbf16, #tpu.memory_space<vmem>>, vector<8x12xbf16>,
    %c1_17 = arith.constant 1 : index
    %c0_18 = arith.constant 0 : index
    %c0_19 = arith.constant 0 : index
    %c0_20 = arith.constant 0 : index
    %12 = vector.load %arg2[%c1_17, %c0_18, %c0_19, %c0_20] : memref<8x4x8x12xbf16, #tpu.memory_space<vmem>>, vector<1x1x8x12xbf16>
    %13 = vector.shape_cast %12 : vector<1x1x8x12xbf16> to vector<8x12xbf16>
    %c8 = arith.constant 8 : index
    %c0_21 = arith.constant 0 : index
    %14 = vector.load %arg6[%c8, %c0_21] : memref<64x48xbf16, #tpu.memory_space<vmem>>, vector<8x12xbf16>
    tpu.vector_store %arg6[%c8, %c0_21], %13 {strides = array<i32>} : memref<64x48xbf16, #tpu.memory_space<vmem>>, vector<8x12xbf16>,
    %c1_22 = arith.constant 1 : index
    %c1_23 = arith.constant 1 : index
    %c0_24 = arith.constant 0 : index
    %c0_25 = arith.constant 0 : index
    %15 = vector.load %arg2[%c1_22, %c1_23, %c0_24, %c0_25] : memref<8x4x8x12xbf16, #tpu.memory_space<vmem>>, vector<1x1x8x12xbf16>
    %16 = vector.shape_cast %15 : vector<1x1x8x12xbf16> to vector<8x12xbf16>
    %c8_26 = arith.constant 8 : index
    %c12_27 = arith.constant 12 : index
    %17 = vector.load %arg6[%c8_26, %c12_27] : memref<64x48xbf16, #tpu.memory_space<vmem>>, vector<8x12xbf16>
    tpu.vector_store %arg6[%c8_26, %c12_27], %16 {strides = array<i32>} : memref<64x48xbf16, #tpu.memory_space<vmem>>, vector<8x12xbf16>,
    %c1_28 = arith.constant 1 : index
    %c2_29 = arith.constant 2 : index
    %c0_30 = arith.constant 0 : index
    %c0_31 = arith.constant 0 : index
    %18 = vector.load %arg2[%c1_28, %c2_29, %c0_30, %c0_31] : memref<8x4x8x12xbf16, #tpu.memory_space<vmem>>, vector<1x1x8x12xbf16>
    %19 = vector.shape_cast %18 : vector<1x1x8x12xbf16> to vector<8x12xbf16>
    %c8_32 = arith.constant 8 : index
    %c24_33 = arith.constant 24 : index
    %20 = vector.load %arg6[%c8_32, %c24_33] : memref<64x48xbf16, #tpu.memory_space<vmem>>, vector<8x12xbf16>
    tpu.vector_store %arg6[%c8_32, %c24_33], %19 {strides = array<i32>} : memref<64x48xbf16, #tpu.memory_space<vmem>>, vector<8x12xbf16>,
    %c1_34 = arith.constant 1 : index
    %c3_35 = arith.constant 3 : index
    %c0_36 = arith.constant 0 : index
    %c0_37 = arith.constant 0 : index
    %21 = vector.load %arg2[%c1_34, %c3_35, %c0_36, %c0_37] : memref<8x4x8x12xbf16, #tpu.memory_space<vmem>>, vector<1x1x8x12xbf16>
    %22 = vector.shape_cast %21 : vector<1x1x8x12xbf16> to vector<8x12xbf16>
    %c8_38 = arith.constant 8 : index
    %c36_39 = arith.constant 36 : index
    %23 = vector.load %arg6[%c8_38, %c36_39] : memref<64x48xbf16, #tpu.memory_space<vmem>>, vector<8x12xbf16>
    tpu.vector_store %arg6[%c8_38, %c36_39], %22 {strides = array<i32>} : memref<64x48xbf16, #tpu.memory_space<vmem>>, vector<8x12xbf16>,
    %c2_40 = arith.constant 2 : index
    %c0_41 = arith.constant 0 : index
    %c0_42 = arith.constant 0 : index
    %c0_43 = arith.constant 0 : index
    %24 = vector.load %arg2[%c2_40, %c0_41, %c0_42, %c0_43] : memref<8x4x8x12xbf16, #tpu.memory_space<vmem>>, vector<1x1x8x12xbf16>
    %25 = vector.shape_cast %24 : vector<1x1x8x12xbf16> to vector<8x12xbf16>
    %c16 = arith.constant 16 : index
    %c0_44 = arith.constant 0 : index
    %26 = vector.load %arg6[%c16, %c0_44] : memref<64x48xbf16, #tpu.memory_space<vmem>>, vector<8x12xbf16>
    tpu.vector_store %arg6[%c16, %c0_44], %25 {strides = array<i32>} : memref<64x48xbf16, #tpu.memory_space<vmem>>, vector<8x12xbf16>,
    %c2_45 = arith.constant 2 : index
    %c1_46 = arith.constant 1 : index
    %c0_47 = arith.constant 0 : index
    %c0_48 = arith.constant 0 : index
    %27 = vector.load %arg2[%c2_45, %c1_46, %c0_47, %c0_48] : memref<8x4x8x12xbf16, #tpu.memory_space<vmem>>, vector<1x1x8x12xbf16>
    %28 = vector.shape_cast %27 : vector<1x1x8x12xbf16> to vector<8x12xbf16>
    %c16_49 = arith.constant 16 : index
    %c12_50 = arith.constant 12 : index
    %29 = vector.load %arg6[%c16_49, %c12_50] : memref<64x48xbf16, #tpu.memory_space<vmem>>, vector<8x12xbf16>
    tpu.vector_store %arg6[%c16_49, %c12_50], %28 {strides = array<i32>} : memref<64x48xbf16, #tpu.memory_space<vmem>>, vector<8x12xbf16>,
    %c2_51 = arith.constant 2 : index
    %c2_52 = arith.constant 2 : index
    %c0_53 = arith.constant 0 : index
    %c0_54 = arith.constant 0 : index
    %30 = vector.load %arg2[%c2_51, %c2_52, %c0_53, %c0_54] : memref<8x4x8x12xbf16, #tpu.memory_space<vmem>>, vector<1x1x8x12xbf16>
    %31 = vector.shape_cast %30 : vector<1x1x8x12xbf16> to vector<8x12xbf16>
    %c16_55 = arith.constant 16 : index
    %c24_56 = arith.constant 24 : index
    %32 = vector.load %arg6[%c16_55, %c24_56] : memref<64x48xbf16, #tpu.memory_space<vmem>>, vector<8x12xbf16>
    tpu.vector_store %arg6[%c16_55, %c24_56], %31 {strides = array<i32>} : memref<64x48xbf16, #tpu.memory_space<vmem>>, vector<8x12xbf16>,
    %c2_57 = arith.constant 2 : index
    %c3_58 = arith.constant 3 : index
    %c0_59 = arith.constant 0 : index
    %c0_60 = arith.constant 0 : index
    %33 = vector.load %arg2[%c2_57, %c3_58, %c0_59, %c0_60] : memref<8x4x8x12xbf16, #tpu.memory_space<vmem>>, vector<1x1x8x12xbf16>
    %34 = vector.shape_cast %33 : vector<1x1x8x12xbf16> to vector<8x12xbf16>
    %c16_61 = arith.constant 16 : index
    %c36_62 = arith.constant 36 : index
    %35 = vector.load %arg6[%c16_61, %c36_62] : memref<64x48xbf16, #tpu.memory_space<vmem>>, vector<8x12xbf16>
    tpu.vector_store %arg6[%c16_61, %c36_62], %34 {strides = array<i32>} : memref<64x48xbf16, #tpu.memory_space<vmem>>, vector<8x12xbf16>,
    %c3_63 = arith.constant 3 : index
    %c0_64 = arith.constant 0 : index
    %c0_65 = arith.constant 0 : index
    %c0_66 = arith.constant 0 : index
    %36 = vector.load %arg2[%c3_63, %c0_64, %c0_65, %c0_66] : memref<8x4x8x12xbf16, #tpu.memory_space<vmem>>, vector<1x1x8x12xbf16>
    %37 = vector.shape_cast %36 : vector<1x1x8x12xbf16> to vector<8x12xbf16>
    %c24_67 = arith.constant 24 : index
    %c0_68 = arith.constant 0 : index
    %38 = vector.load %arg6[%c24_67, %c0_68] : memref<64x48xbf16, #tpu.memory_space<vmem>>, vector<8x12xbf16>
    tpu.vector_store %arg6[%c24_67, %c0_68], %37 {strides = array<i32>} : memref<64x48xbf16, #tpu.memory_space<vmem>>, vector<8x12xbf16>,
    %c3_69 = arith.constant 3 : index
    %c1_70 = arith.constant 1 : index
    %c0_71 = arith.constant 0 : index
    %c0_72 = arith.constant 0 : index
    %39 = vector.load %arg2[%c3_69, %c1_70, %c0_71, %c0_72] : memref<8x4x8x12xbf16, #tpu.memory_space<vmem>>, vector<1x1x8x12xbf16>
    %40 = vector.shape_cast %39 : vector<1x1x8x12xbf16> to vector<8x12xbf16>
    %c24_73 = arith.constant 24 : index
    %c12_74 = arith.constant 12 : index
    %41 = vector.load %arg6[%c24_73, %c12_74] : memref<64x48xbf16, #tpu.memory_space<vmem>>, vector<8x12xbf16>
    tpu.vector_store %arg6[%c24_73, %c12_74], %40 {strides = array<i32>} : memref<64x48xbf16, #tpu.memory_space<vmem>>, vector<8x12xbf16>,
    %c3_75 = arith.constant 3 : index
    %c2_76 = arith.constant 2 : index
    %c0_77 = arith.constant 0 : index
    %c0_78 = arith.constant 0 : index
    %42 = vector.load %arg2[%c3_75, %c2_76, %c0_77, %c0_78] : memref<8x4x8x12xbf16, #tpu.memory_space<vmem>>, vector<1x1x8x12xbf16>
    %43 = vector.shape_cast %42 : vector<1x1x8x12xbf16> to vector<8x12xbf16>
    %c24_79 = arith.constant 24 : index
    %c24_80 = arith.constant 24 : index
    %44 = vector.load %arg6[%c24_79, %c24_80] : memref<64x48xbf16, #tpu.memory_space<vmem>>, vector<8x12xbf16>
    tpu.vector_store %arg6[%c24_79, %c24_80], %43 {strides = array<i32>} : memref<64x48xbf16, #tpu.memory_space<vmem>>, vector<8x12xbf16>,
    %c3_81 = arith.constant 3 : index
    %c3_82 = arith.constant 3 : index
    %c0_83 = arith.constant 0 : index
    %c0_84 = arith.constant 0 : index
    %45 = vector.load %arg2[%c3_81, %c3_82, %c0_83, %c0_84] : memref<8x4x8x12xbf16, #tpu.memory_space<vmem>>, vector<1x1x8x12xbf16>
    %46 = vector.shape_cast %45 : vector<1x1x8x12xbf16> to vector<8x12xbf16>
    %c24_85 = arith.constant 24 : index
    %c36_86 = arith.constant 36 : index
    %47 = vector.load %arg6[%c24_85, %c36_86] : memref<64x48xbf16, #tpu.memory_space<vmem>>, vector<8x12xbf16>
    tpu.vector_store %arg6[%c24_85, %c36_86], %46 {strides = array<i32>} : memref<64x48xbf16, #tpu.memory_space<vmem>>, vector<8x12xbf16>,
    %c4 = arith.constant 4 : index
    %c0_87 = arith.constant 0 : index
    %c0_88 = arith.constant 0 : index
    %c0_89 = arith.constant 0 : index
    %48 = vector.load %arg2[%c4, %c0_87, %c0_88, %c0_89] : memref<8x4x8x12xbf16, #tpu.memory_space<vmem>>, vector<1x1x8x12xbf16>
    %49 = vector.shape_cast %48 : vector<1x1x8x12xbf16> to vector<8x12xbf16>
    %c32 = arith.constant 32 : index
    %c0_90 = arith.constant 0 : index
    %50 = vector.load %arg6[%c32, %c0_90] : memref<64x48xbf16, #tpu.memory_space<vmem>>, vector<8x12xbf16>
    tpu.vector_store %arg6[%c32, %c0_90], %49 {strides = array<i32>} : memref<64x48xbf16, #tpu.memory_space<vmem>>, vector<8x12xbf16>,
    %c4_91 = arith.constant 4 : index
    %c1_92 = arith.constant 1 : index
    %c0_93 = arith.constant 0 : index
    %c0_94 = arith.constant 0 : index
    %51 = vector.load %arg2[%c4_91, %c1_92, %c0_93, %c0_94] : memref<8x4x8x12xbf16, #tpu.memory_space<vmem>>, vector<1x1x8x12xbf16>
    %52 = vector.shape_cast %51 : vector<1x1x8x12xbf16> to vector<8x12xbf16>
    %c32_95 = arith.constant 32 : index
    %c12_96 = arith.constant 12 : index
    %53 = vector.load %arg6[%c32_95, %c12_96] : memref<64x48xbf16, #tpu.memory_space<vmem>>, vector<8x12xbf16>
    tpu.vector_store %arg6[%c32_95, %c12_96], %52 {strides = array<i32>} : memref<64x48xbf16, #tpu.memory_space<vmem>>, vector<8x12xbf16>,
    %c4_97 = arith.constant 4 : index
    %c2_98 = arith.constant 2 : index
    %c0_99 = arith.constant 0 : index
    %c0_100 = arith.constant 0 : index
    %54 = vector.load %arg2[%c4_97, %c2_98, %c0_99, %c0_100] : memref<8x4x8x12xbf16, #tpu.memory_space<vmem>>, vector<1x1x8x12xbf16>
    %55 = vector.shape_cast %54 : vector<1x1x8x12xbf16> to vector<8x12xbf16>
    %c32_101 = arith.constant 32 : index
    %c24_102 = arith.constant 24 : index
    %56 = vector.load %arg6[%c32_101, %c24_102] : memref<64x48xbf16, #tpu.memory_space<vmem>>, vector<8x12xbf16>
    tpu.vector_store %arg6[%c32_101, %c24_102], %55 {strides = array<i32>} : memref<64x48xbf16, #tpu.memory_space<vmem>>, vector<8x12xbf16>,
    %c4_103 = arith.constant 4 : index
    %c3_104 = arith.constant 3 : index
    %c0_105 = arith.constant 0 : index
    %c0_106 = arith.constant 0 : index
    %57 = vector.load %arg2[%c4_103, %c3_104, %c0_105, %c0_106] : memref<8x4x8x12xbf16, #tpu.memory_space<vmem>>, vector<1x1x8x12xbf16>
    %58 = vector.shape_cast %57 : vector<1x1x8x12xbf16> to vector<8x12xbf16>
    %c32_107 = arith.constant 32 : index
    %c36_108 = arith.constant 36 : index
    %59 = vector.load %arg6[%c32_107, %c36_108] : memref<64x48xbf16, #tpu.memory_space<vmem>>, vector<8x12xbf16>
    tpu.vector_store %arg6[%c32_107, %c36_108], %58 {strides = array<i32>} : memref<64x48xbf16, #tpu.memory_space<vmem>>, vector<8x12xbf16>,
    %c5 = arith.constant 5 : index
    %c0_109 = arith.constant 0 : index
    %c0_110 = arith.constant 0 : index
    %c0_111 = arith.constant 0 : index
    %60 = vector.load %arg2[%c5, %c0_109, %c0_110, %c0_111] : memref<8x4x8x12xbf16, #tpu.memory_space<vmem>>, vector<1x1x8x12xbf16>
    %61 = vector.shape_cast %60 : vector<1x1x8x12xbf16> to vector<8x12xbf16>
    %c40 = arith.constant 40 : index
    %c0_112 = arith.constant 0 : index
    %62 = vector.load %arg6[%c40, %c0_112] : memref<64x48xbf16, #tpu.memory_space<vmem>>, vector<8x12xbf16>
    tpu.vector_store %arg6[%c40, %c0_112], %61 {strides = array<i32>} : memref<64x48xbf16, #tpu.memory_space<vmem>>, vector<8x12xbf16>,
    %c5_113 = arith.constant 5 : index
    %c1_114 = arith.constant 1 : index
    %c0_115 = arith.constant 0 : index
    %c0_116 = arith.constant 0 : index
    %63 = vector.load %arg2[%c5_113, %c1_114, %c0_115, %c0_116] : memref<8x4x8x12xbf16, #tpu.memory_space<vmem>>, vector<1x1x8x12xbf16>
    %64 = vector.shape_cast %63 : vector<1x1x8x12xbf16> to vector<8x12xbf16>
    %c40_117 = arith.constant 40 : index
    %c12_118 = arith.constant 12 : index
    %65 = vector.load %arg6[%c40_117, %c12_118] : memref<64x48xbf16, #tpu.memory_space<vmem>>, vector<8x12xbf16>
    tpu.vector_store %arg6[%c40_117, %c12_118], %64 {strides = array<i32>} : memref<64x48xbf16, #tpu.memory_space<vmem>>, vector<8x12xbf16>,
    %c5_119 = arith.constant 5 : index
    %c2_120 = arith.constant 2 : index
    %c0_121 = arith.constant 0 : index
    %c0_122 = arith.constant 0 : index
    %66 = vector.load %arg2[%c5_119, %c2_120, %c0_121, %c0_122] : memref<8x4x8x12xbf16, #tpu.memory_space<vmem>>, vector<1x1x8x12xbf16>
    %67 = vector.shape_cast %66 : vector<1x1x8x12xbf16> to vector<8x12xbf16>
    %c40_123 = arith.constant 40 : index
    %c24_124 = arith.constant 24 : index
    %68 = vector.load %arg6[%c40_123, %c24_124] : memref<64x48xbf16, #tpu.memory_space<vmem>>, vector<8x12xbf16>
    tpu.vector_store %arg6[%c40_123, %c24_124], %67 {strides = array<i32>} : memref<64x48xbf16, #tpu.memory_space<vmem>>, vector<8x12xbf16>,
    %c5_125 = arith.constant 5 : index
    %c3_126 = arith.constant 3 : index
    %c0_127 = arith.constant 0 : index
    %c0_128 = arith.constant 0 : index
    %69 = vector.load %arg2[%c5_125, %c3_126, %c0_127, %c0_128] : memref<8x4x8x12xbf16, #tpu.memory_space<vmem>>, vector<1x1x8x12xbf16>
    %70 = vector.shape_cast %69 : vector<1x1x8x12xbf16> to vector<8x12xbf16>
    %c40_129 = arith.constant 40 : index
    %c36_130 = arith.constant 36 : index
    %71 = vector.load %arg6[%c40_129, %c36_130] : memref<64x48xbf16, #tpu.memory_space<vmem>>, vector<8x12xbf16>
    tpu.vector_store %arg6[%c40_129, %c36_130], %70 {strides = array<i32>} : memref<64x48xbf16, #tpu.memory_space<vmem>>, vector<8x12xbf16>,
    %c6 = arith.constant 6 : index
    %c0_131 = arith.constant 0 : index
    %c0_132 = arith.constant 0 : index
    %c0_133 = arith.constant 0 : index
    %72 = vector.load %arg2[%c6, %c0_131, %c0_132, %c0_133] : memref<8x4x8x12xbf16, #tpu.memory_space<vmem>>, vector<1x1x8x12xbf16>
    %73 = vector.shape_cast %72 : vector<1x1x8x12xbf16> to vector<8x12xbf16>
    %c48 = arith.constant 48 : index
    %c0_134 = arith.constant 0 : index
    %74 = vector.load %arg6[%c48, %c0_134] : memref<64x48xbf16, #tpu.memory_space<vmem>>, vector<8x12xbf16>
    tpu.vector_store %arg6[%c48, %c0_134], %73 {strides = array<i32>} : memref<64x48xbf16, #tpu.memory_space<vmem>>, vector<8x12xbf16>,
    %c6_135 = arith.constant 6 : index
    %c1_136 = arith.constant 1 : index
    %c0_137 = arith.constant 0 : index
    %c0_138 = arith.constant 0 : index
    %75 = vector.load %arg2[%c6_135, %c1_136, %c0_137, %c0_138] : memref<8x4x8x12xbf16, #tpu.memory_space<vmem>>, vector<1x1x8x12xbf16>
    %76 = vector.shape_cast %75 : vector<1x1x8x12xbf16> to vector<8x12xbf16>
    %c48_139 = arith.constant 48 : index
    %c12_140 = arith.constant 12 : index
    %77 = vector.load %arg6[%c48_139, %c12_140] : memref<64x48xbf16, #tpu.memory_space<vmem>>, vector<8x12xbf16>
    tpu.vector_store %arg6[%c48_139, %c12_140], %76 {strides = array<i32>} : memref<64x48xbf16, #tpu.memory_space<vmem>>, vector<8x12xbf16>,
    %c6_141 = arith.constant 6 : index
    %c2_142 = arith.constant 2 : index
    %c0_143 = arith.constant 0 : index
    %c0_144 = arith.constant 0 : index
    %78 = vector.load %arg2[%c6_141, %c2_142, %c0_143, %c0_144] : memref<8x4x8x12xbf16, #tpu.memory_space<vmem>>, vector<1x1x8x12xbf16>
    %79 = vector.shape_cast %78 : vector<1x1x8x12xbf16> to vector<8x12xbf16>
    %c48_145 = arith.constant 48 : index
    %c24_146 = arith.constant 24 : index
    %80 = vector.load %arg6[%c48_145, %c24_146] : memref<64x48xbf16, #tpu.memory_space<vmem>>, vector<8x12xbf16>
    tpu.vector_store %arg6[%c48_145, %c24_146], %79 {strides = array<i32>} : memref<64x48xbf16, #tpu.memory_space<vmem>>, vector<8x12xbf16>,
    %c6_147 = arith.constant 6 : index
    %c3_148 = arith.constant 3 : index
    %c0_149 = arith.constant 0 : index
    %c0_150 = arith.constant 0 : index
    %81 = vector.load %arg2[%c6_147, %c3_148, %c0_149, %c0_150] : memref<8x4x8x12xbf16, #tpu.memory_space<vmem>>, vector<1x1x8x12xbf16>
    %82 = vector.shape_cast %81 : vector<1x1x8x12xbf16> to vector<8x12xbf16>
    %c48_151 = arith.constant 48 : index
    %c36_152 = arith.constant 36 : index
    %83 = vector.load %arg6[%c48_151, %c36_152] : memref<64x48xbf16, #tpu.memory_space<vmem>>, vector<8x12xbf16>
    tpu.vector_store %arg6[%c48_151, %c36_152], %82 {strides = array<i32>} : memref<64x48xbf16, #tpu.memory_space<vmem>>, vector<8x12xbf16>,
    %c7 = arith.constant 7 : index
    %c0_153 = arith.constant 0 : index
    %c0_154 = arith.constant 0 : index
    %c0_155 = arith.constant 0 : index
    %84 = vector.load %arg2[%c7, %c0_153, %c0_154, %c0_155] : memref<8x4x8x12xbf16, #tpu.memory_space<vmem>>, vector<1x1x8x12xbf16>
    %85 = vector.shape_cast %84 : vector<1x1x8x12xbf16> to vector<8x12xbf16>
    %c56 = arith.constant 56 : index
    %c0_156 = arith.constant 0 : index
    %86 = vector.load %arg6[%c56, %c0_156] : memref<64x48xbf16, #tpu.memory_space<vmem>>, vector<8x12xbf16>
    tpu.vector_store %arg6[%c56, %c0_156], %85 {strides = array<i32>} : memref<64x48xbf16, #tpu.memory_space<vmem>>, vector<8x12xbf16>,
    %c7_157 = arith.constant 7 : index
    %c1_158 = arith.constant 1 : index
    %c0_159 = arith.constant 0 : index
    %c0_160 = arith.constant 0 : index
    %87 = vector.load %arg2[%c7_157, %c1_158, %c0_159, %c0_160] : memref<8x4x8x12xbf16, #tpu.memory_space<vmem>>, vector<1x1x8x12xbf16>
    %88 = vector.shape_cast %87 : vector<1x1x8x12xbf16> to vector<8x12xbf16>
    %c56_161 = arith.constant 56 : index
    %c12_162 = arith.constant 12 : index
    %89 = vector.load %arg6[%c56_161, %c12_162] : memref<64x48xbf16, #tpu.memory_space<vmem>>, vector<8x12xbf16>
    tpu.vector_store %arg6[%c56_161, %c12_162], %88 {strides = array<i32>} : memref<64x48xbf16, #tpu.memory_space<vmem>>, vector<8x12xbf16>,
    %c7_163 = arith.constant 7 : index
    %c2_164 = arith.constant 2 : index
    %c0_165 = arith.constant 0 : index
    %c0_166 = arith.constant 0 : index
    %90 = vector.load %arg2[%c7_163, %c2_164, %c0_165, %c0_166] : memref<8x4x8x12xbf16, #tpu.memory_space<vmem>>, vector<1x1x8x12xbf16>
    %91 = vector.shape_cast %90 : vector<1x1x8x12xbf16> to vector<8x12xbf16>
    %c56_167 = arith.constant 56 : index
    %c24_168 = arith.constant 24 : index
    %92 = vector.load %arg6[%c56_167, %c24_168] : memref<64x48xbf16, #tpu.memory_space<vmem>>, vector<8x12xbf16>
    tpu.vector_store %arg6[%c56_167, %c24_168], %91 {strides = array<i32>} : memref<64x48xbf16, #tpu.memory_space<vmem>>, vector<8x12xbf16>,
    %c7_169 = arith.constant 7 : index
    %c3_170 = arith.constant 3 : index
    %c0_171 = arith.constant 0 : index
    %c0_172 = arith.constant 0 : index
    %93 = vector.load %arg2[%c7_169, %c3_170, %c0_171, %c0_172] : memref<8x4x8x12xbf16, #tpu.memory_space<vmem>>, vector<1x1x8x12xbf16>
    %94 = vector.shape_cast %93 : vector<1x1x8x12xbf16> to vector<8x12xbf16>
    %c56_173 = arith.constant 56 : index
    %c36_174 = arith.constant 36 : index
    %95 = vector.load %arg6[%c56_173, %c36_174] : memref<64x48xbf16, #tpu.memory_space<vmem>>, vector<8x12xbf16>
    tpu.vector_store %arg6[%c56_173, %c36_174], %94 {strides = array<i32>} : memref<64x48xbf16, #tpu.memory_space<vmem>>, vector<8x12xbf16>,
    %c0_175 = arith.constant 0 : index
    %c0_176 = arith.constant 0 : index
    %96 = vector.load %arg6[%c0_175, %c0_176] : memref<64x48xbf16, #tpu.memory_space<vmem>>, vector<64x48xbf16>
    %c0_177 = arith.constant 0 : index
    %c0_178 = arith.constant 0 : index
    %97 = vector.load %arg3[%c0_177, %c0_178] : memref<48x128xbf16, #tpu.memory_space<vmem>>, vector<48x128xbf16>
    %cst = arith.constant dense<0.000000e+00> : vector<64x128xf32>
    %98 = tpu.matmul %96, %97, %cst {dimension_numbers = #tpu.dot_dimension_numbers<[1], [0], [0], [1], [0, 0, 1, 1], [], []>} : vector<64x48xbf16>, vector<48x128xbf16>, vector<64x128xf32> -> vector<64x128xf32>
    %c0_179 = arith.constant 0 : index
    %c0_180 = arith.constant 0 : index
    %99 = vector.load %arg4[%c0_179, %c0_180] : memref<1x128xf32, #tpu.memory_space<vmem>>, vector<1x128xf32>
    %100 = vector.broadcast %99 : vector<1x128xf32> to vector<64x128xf32>
    %101 = arith.addf %98, %100 : vector<64x128xf32>
    %cst_181 = arith.constant 0.000000e+00 : f32
    %102 = vector.broadcast %cst_181 : f32 to vector<64x128xf32>
    %103 = arith.maximumf %101, %102 : vector<64x128xf32>
    %104 = arith.truncf %103 : vector<64x128xf32> to vector<64x128xbf16>
    %c0_182 = arith.constant 0 : index
    %c0_183 = arith.constant 0 : index
    %105 = vector.load %arg5[%c0_182, %c0_183] : memref<64x128xbf16, #tpu.memory_space<vmem>>, vector<64x128xbf16>
    tpu.vector_store %arg5[%c0_182, %c0_183], %104 {strides = array<i32>} : memref<64x128xbf16, #tpu.memory_space<vmem>>, vector<64x128xbf16>,
    return
  }
  func.func @transform_0(%arg0: i32, %arg1: i32) -> (i32, i32, i32, i32) {
    %c0_i32 = arith.constant 0 : i32
    %c0_i32_0 = arith.constant 0 : i32
    %c0_i32_1 = arith.constant 0 : i32
    %c0_i32_2 = arith.constant 0 : i32
    return %arg0, %c0_i32, %c0_i32_0, %c0_i32_1 : i32, i32, i32, i32
  }
  func.func @transform_1(%arg0: i32, %arg1: i32) -> (i32, i32) {
    %c0_i32 = arith.constant 0 : i32
    %c0_i32_0 = arith.constant 0 : i32
    return %c0_i32, %arg1 : i32, i32
  }
  func.func @transform_2(%arg0: i32, %arg1: i32) -> (i32, i32) {
    %c0_i32 = arith.constant 0 : i32
    %c0_i32_0 = arith.constant 0 : i32
    return %c0_i32, %arg1 : i32, i32
  }
  func.func @transform_3(%arg0: i32, %arg1: i32) -> (i32, i32) {
    %c0_i32 = arith.constant 0 : i32
    return %arg0, %arg1 : i32, i32
  }
}

</mosaic_0001>

<bundles_post_ra>
// kernel: tpu_custom_call.1
= control target key start
LH: loop header
LB: loop body
LE: loop exit
PB: predicated region body
PF: predicated region fallthrough
CT: control target
= control target key end

     0   :  { %8 = vsyncpa [#allocation4], 0  ;;  %s1331_s0 = inlined_call_operand.vmem [shape: bf16[16,4,8,12], index: 0, kind: input, shape index: {}]   ;;  %s1332_s1 = inlined_call_operand.vmem [shape: bf16[48,128], index: 1, kind: input, shape index: {}]   ;;  %s1333_s2 = inlined_call_operand.vmem [shape: f32[1,128], index: 2, kind: input, shape index: {}]   ;;  %s1334_s3 = inlined_call_operand.hbm [shape: bf16[128,128], index: 3, kind: output, shape index: {}]  }
   0x1   :  { %10 = vsyncpa [#allocation4 + $0x1], 0  ;;  %s1107_s12 = smov 0   ;;  %s1109_s13 = smov 0  }
   0x2   :  { %s1111_s14 = smov 0   ;;  %s1113_s15 = smov 0  }
   0x3   :  { %s1115_s16 = smov 0   ;;  %s1117_s17 = smov 0  }
   0x4 LB: > { %s759_s18 = sadd.s32 4294967295, %s1079_s17   ;;  %s760_s19 = sadd.s32 4294967294, %s1079_s17   ;;  %s1079_s17 = sphi %s1117_s17, %s16_s17   ;;  %s1075_s16 = sphi %s1115_s16, %s1341_s16   ;;  %s1071_s15 = sphi %s1113_s15, %s1340_s15   ;;  %s1067_s14 = sphi %s1111_s14, %s1339_s14   ;;  %s1063_s13 = sphi %s1109_s13, %s1338_s13   ;;  %s1059_s12 = sphi %s1107_s12, %s1337_s12  }
   0x5   : > { %s28_s20 = sadd.s32 1, %s1075_s16  ;;  %s115_s21 = sadd.s32 1, %s1067_s14 }
   0x6   : > { %p30_p0 = scmp.ge.s32.totalorder %s28_s20, 2  ;;  %p125_p1 = scmp.ne.s32.totalorder %s1067_s14, %s1063_s13 }
   0x7   : > { %p126_p2 = scmp.eq.s32.totalorder %s759_s18, 1  ;;  %p131_p3 = scmp.ne.s32.totalorder %s1063_s13, %s1059_s12 }
   0x8   : > { %s1343_s20 = smov (%p30_p0, %s28_s20), 0  ;;  %p132_p5 = scmp.eq.s32.totalorder %s760_s19, 1 }
   0x9   : > { %p1147_p4 = por %p126_p2, %p125_p1  ;;  %s110_s23 = ssub.s32 %s1075_s16, %s1343_s20 }
   0xa   : > { %p765_p6 = scmp.ge.s32.totalorder %s1079_s17, 1  ;;  %p113_p7 = scmp.eq.s32.totalorder %s110_s23, 0 }
   0xb   : > { %p1154_p8 = por %p132_p5, %p131_p3  ;;  %p173_p9 = scmp.lt.s32.totalorder %s1079_s17, 3 }
   0xc   : > { %s1160_s25 = scalar_select %p113_p7, %s1067_s14, %s115_s21  }
   0xd   : > { %p174_p10 = pnand %p765_p6, %p173_p9 }
   0xe   : > { %s767_s26 = sshll.u32 (!%p174_p10), %s1071_s15, 3  ;;  %s1081_s4 = smov (!%p174_p10), 12   ;;  %vm222_vm0 = vcmask (!%p174_p10), 93184   ;;  %vm260_vm1 = vcmask (!%p174_p10), 97284   ;;  %v998_v22 = vld [vmem:[%s1332_s1] sm:$0xff] (!%p174_p10)   ;;  %v999_v25 = vld [vmem:[%s1332_s1 + $0x8] sm:$0xff] (!%p174_p10)  }
   0xf   : > { %177 = sbr.rel (%p174_p10) target bundleno = 430 (0x1ae), region = 32  ;;  %p206_p11 = scmp.lt.s32.totalorder (!%p174_p10), %s767_s26, 15  ;;  %890 = vmatprep.subr.bf16.mxu0 (!%p174_p10), %v998_v22  ;;  %904 = vmatprep.subr.bf16.mxu1 (!%p174_p10), %v998_v22  ;;  %v1000_v28 = vld [vmem:[%s1332_s1 + $0x10] sm:$0xff] (!%p174_p10)   ;;  %vm232_vm2 = vcmask (!%p174_p10), 191584   ;;  %vm270_vm3 = vcmask (!%p174_p10), 195684   ;;  %vm280_vm4 = vcmask (!%p174_p10), 294084  }
  0x10   : > { %s1082_s5 = smov (!%p174_p10), 24   ;;  %s1083_s8 = smov (!%p174_p10), 36   ;;  %891 = vmatpush3.bf16.msra.mxu0 (!%p174_p10), %v998_v22  ;;  %907 = vmatpush3.bf16.msra.mxu1 (!%p174_p10), %v998_v22  ;;  %vm242_vm5 = vcmask (!%p174_p10), 289984   ;;  %vm290_vm6 = vcmask (!%p174_p10), 392484   ;;  %vm252_vm7 = vcmask (!%p174_p10), 388384   ;;  %vm519_vm8 = vcmask (!%p174_p10), 392192  }
  0x11   : > { %892 = vmatprep.subr.bf16.mxu0 (!%p174_p10), %v999_v25  ;;  %905 = vmatprep.subr.bf16.mxu1 (!%p174_p10), %v999_v25  ;;  %v829_v63 = vld [vmem:[%s1333_s2] ss:$0 sm:$0xff] (!%p174_p10)  ;;  %s202_s23 = sand.u32 (!%p174_p10), 1, %s1063_s13   ;;  %s859_s29 = sshll.u32 (!%p174_p10), %s1071_s15, 9 }
  0x12   : > { %s1285_s15 = scalar_lea.sflag (!%p174_p10), [#allocation4], %s202_s23  ;;  %s1084_s7 = smov (!%p174_p10), [#allocation3]  }
  0x14   : > { %893 = vmatpush3.bf16.msra.mxu0 (!%p174_p10), %v999_v25  ;;  %908 = vmatpush3.bf16.msra.mxu1 (!%p174_p10), %v999_v25 }
  0x15   : > { %894 = vmatprep.subr.bf16.mxu0 (!%p174_p10), %v1000_v28  ;;  %906 = vmatprep.subr.bf16.mxu1 (!%p174_p10), %v1000_v28 }
  0x16   : > { %s1345_s26 = smov (!%p206_p11, %s767_s26), 15 }
  0x17   : > { %s850_s27 = sshll.u32 %s1345_s26, 4  ;;  %s766_s26 = sshll.u32 %s202_s23, 5 }
  0x18   : > { %s1166_s30 = scalar_lea.vmem %s1331_s0, %s850_s27  ;;  %895 = vmatpush3.bf16.msra.mxu0 %v1000_v28  ;;  %909 = vmatpush3.bf16.msra.mxu1 %v1000_v28  ;;  %s204_s27 = scalar_lea.vmem [#allocation3], %s766_s26 }
  0x19   : > { %v970_v0 = vld [vmem:[%s1166_s30 + $0x44] ss:$0 sps:$4 sm:$0xff]   ;;  %v972_v2 = vld [vmem:[%s1166_s30 + $0x54] ss:$0 sps:$4 sm:$0xff]   ;;  %v974_v4 = vld [vmem:[%s1166_s30 + $0x18] ss:$0 sps:$4 sm:$0xff]  }
  0x1a   : > { %v971_v1 = vld [vmem:[%s1166_s30 + $0x4] ss:$0 sps:$4 sm:$0xff]   ;;  %364 = vrot.lane.b32.xlu1 %v970_v0, %s1081_s4  ;;  %v973_v3 = vld [vmem:[%s1166_s30 + $0x14] ss:$0 sps:$4 sm:$0xff]   ;;  %v975_v5 = vld [vmem:[%s1166_s30 + $0x8] ss:$0 sps:$4 sm:$0xff]  }
  0x1b   : > { %229 = vrot.lane.b32.xlu0 %v971_v1, %s1081_s4  ;;  %v976_v6 = vld [vmem:[%s1166_s30 + $0x34] ss:$0 sps:$4 sm:$0xff]   ;;  %v977_v7 = vld [vmem:[%s1166_s30 + $0x24] ss:$0 sps:$4 sm:$0xff]   ;;  %v978_v8 = vld [vmem:[%s1166_s30 + $0x58] ss:$0 sps:$4 sm:$0xff]  }
  0x1c   : > { %v979_v9 = vld [vmem:[%s1166_s30 + $0x48] ss:$0 sps:$4 sm:$0xff]   ;;  %v980_v10 = vld [vmem:[%s1166_s30 + $0x74] ss:$0 sps:$4 sm:$0xff]   ;;  %v799_v11 = vld [vmem:[%s1166_s30 + $0x40] sm:$0xf] }
  0x1d   : > { %v221_v12 = vld [vmem:[%s1166_s30] sm:$0xf]  ;;  %v981_v13 = vld [vmem:[%s1166_s30 + $0x64] ss:$0 sps:$4 sm:$0xff]   ;;  %358 = vst.msk [vmem:[#allocation2 + $0x10] sm:$0xf] %vm222_vm0, %v799_v11 }
  0x1e   : > { %398 = vrot.lane.b32.xlu1 %v972_v2, %s1081_s4  ;;  %223 = vst.msk [vmem:[#allocation2] sm:$0xf] %vm222_vm0, %v221_v12  ;;  %v994_v14 = vld [vmem:[%s1166_s30 + $0x50] ss:$0 sps:$4 sm:$0xff]   ;;  %v784_v17 = vld [vmem:[%s1166_s30 + $0x20] sm:$0xf] }
  0x1f   : > { %267 = vrot.lane.b32.xlu0 %v973_v3, %s1081_s4  ;;  %v995_v15 = vld [vmem:[%s1166_s30 + $0x10] ss:$0 sps:$4 sm:$0xff]   ;;  %392 = vst.msk [vmem:[#allocation2 + $0x10] sm:$0xf0] %vm260_vm1, %v994_v14  ;;  %v814_v19 = vld [vmem:[%s1166_s30 + $0x60] sm:$0xf] }
  0x20   : > { %v996_v16 = vld [vmem:[%s1166_s30 + $0x30] ss:$0 sps:$4 sm:$0xff]   ;;  %261 = vst.msk [vmem:[#allocation2] sm:$0xf0] %vm260_vm1, %v995_v15  ;;  %v982_v20 = vld [vmem:[%s1166_s30 + $0x1c] ss:$0 sps:$4 sm:$0xff]  }
  0x21   : > { %294 = vst.msk [vmem:[#allocation2 + $0x8] sm:$0xf] %vm222_vm0, %v784_v17  ;;  %v997_v18 = vld [vmem:[%s1166_s30 + $0x70] ss:$0 sps:$4 sm:$0xff]   ;;  %422 = vst.msk [vmem:[#allocation2 + $0x18] sm:$0xf] %vm222_vm0, %v814_v19 }
  0x22   : > { %277 = vrot.lane.b32.xlu1 %v974_v4, %s1082_s5  ;;  %328 = vst.msk [vmem:[#allocation2 + $0x8] sm:$0xf0] %vm260_vm1, %v996_v16  ;;  %456 = vst.msk [vmem:[#allocation2 + $0x18] sm:$0xf0] %vm260_vm1, %v997_v18  ;;  %v983_v21 = vld [vmem:[%s1166_s30 + $0xc] ss:$0 sps:$4 sm:$0xff]  }
  0x23   : > { %239 = vrot.lane.b32.xlu0 %v975_v5, %s1082_s5  ;;  %v984_v23 = vld [vmem:[%s1166_s30 + $0x38] ss:$0 sps:$4 sm:$0xff]   ;;  %v985_v24 = vld [vmem:[%s1166_s30 + $0x28] ss:$0 sps:$4 sm:$0xff]   ;;  %v986_v26 = vld [vmem:[%s1166_s30 + $0x5c] ss:$0 sps:$4 sm:$0xff]  }
  0x24   : > { %v987_v27 = vld [vmem:[%s1166_s30 + $0x4c] ss:$0 sps:$4 sm:$0xff]   ;;  %v988_v29 = vld [vmem:[%s1166_s30 + $0x78] ss:$0 sps:$4 sm:$0xff]   ;;  %v989_v30 = vld [vmem:[%s1166_s30 + $0x68] ss:$0 sps:$4 sm:$0xff]  }
  0x25   : > { %v990_v31 = vld [vmem:[%s1166_s30 + $0x3c] ss:$0 sps:$4 sm:$0xff]   ;;  %v991_v32 = vld [vmem:[%s1166_s30 + $0x2c] ss:$0 sps:$4 sm:$0xff]   ;;  %s660_s28 = sshll.u32 %s204_s27, 4  ;;  %s1276_s28 = int_to_ptr.vmem [resolvable:$true] %s660_s28 }
  0x26   : > { %334 = vrot.lane.b32.xlu1 %v976_v6, %s1081_s4  ;;  %v992_v33 = vld [vmem:[%s1166_s30 + $0x7c] ss:$0 sps:$4 sm:$0xff]   ;;  %v993_v34 = vld [vmem:[%s1166_s30 + $0x6c] ss:$0 sps:$4 sm:$0xff]   ;;  %s1001_s6 = scalar_lea.vmem %s1276_s28, 512 }
  0x27   : > { %300 = vrot.lane.b32.xlu0 %v977_v7, %s1081_s4  ;;  %p1002_p12 = scmp.ne.s32.totalorder %s1276_s28, %s1001_s6 }
  0x29   : > { %p1003_p13 = pnand %p1002_p12, %p1147_p4 }
  0x2a   : > { %407 = vrot.lane.b32.xlu1 %v978_v8, %s1082_s5 }
  0x2b   : > { %373 = vrot.lane.b32.xlu0 %v979_v9, %s1082_s5  ;;  %p1004_p0 = pneg %p1003_p13 }
  0x2e   : > { %462 = vrot.lane.b32.xlu1 %v980_v10, %s1081_s4 }
  0x2f   : > { %428 = vrot.lane.b32.xlu0 %v981_v13, %s1081_s4 }
  0x32   : > { %287 = vrot.lane.b32.xlu1 %v982_v20, %s1083_s8 }
  0x33   : > { %249 = vrot.lane.b32.xlu0 %v983_v21, %s1083_s8 }
  0x36   : > { %343 = vrot.lane.b32.xlu1 %v984_v23, %s1082_s5 }
  0x37   : > { %309 = vrot.lane.b32.xlu0 %v985_v24, %s1082_s5 }
  0x3a   : > { %416 = vrot.lane.b32.xlu1 %v986_v26, %s1083_s8 }
  0x3b   : > { %382 = vrot.lane.b32.xlu0 %v987_v27, %s1083_s8 }
  0x3e   : > { %471 = vrot.lane.b32.xlu1 %v988_v29, %s1082_s5 }
  0x3f   : > { %437 = vrot.lane.b32.xlu0 %v989_v30, %s1082_s5  ;;  %s1281_s5 = scalar_lea.hbm %s1334_s3, %s859_s29 }
  0x42   : > { %352 = vrot.lane.b32.xlu1 %v990_v31, %s1083_s8 }
  0x43   : > { %318 = vrot.lane.b32.xlu0 %v991_v32, %s1083_s8 }
  0x46   : > { %480 = vrot.lane.b32.xlu1 %v992_v33, %s1083_s8 }
  0x47   : > { %446 = vrot.lane.b32.xlu0 %v993_v34, %s1083_s8  ;;  %s1005_s8 = sshll.u32 %s1084_s7, 4  ;;  %s1006_s8 = int_to_ptr.vmem [resolvable:$false] %s1005_s8 }
  0x48   : > { %s1007_s9 = scalar_lea.vmem %s1006_s8, 1024  ;;  %p1008_p1 = scmp.lt.s32.totalorder %s1276_s28, %s1006_s8 }
  0x49   : > { %p1009_p2 = scmp.lt.s32.totalorder %s1007_s9, %s1001_s6 }
  0x4b   : > { %p1010_p3 = por %p1009_p2, %p1008_p1 }
  0x4d   : > { %p1011_p5 = pnand %p1010_p3, %p1004_p0 }
  0x8c   : > { %v365_v35 = vpop.permute.xlu1 %364 }
  0x8d   : > { %367 = vst.msk [vmem:[#allocation2 + $0x10] sm:$0xf] %vm232_vm2, %v365_v35  ;;  %v230_v36 = vpop.permute.xlu0 %229 }
  0x8e   : > { %233 = vst.msk [vmem:[#allocation2] sm:$0xf] %vm232_vm2, %v230_v36 }
  0x90   : > { %v399_v37 = vpop.permute.xlu1 %398 }
  0x91   : > { %401 = vst.msk [vmem:[#allocation2 + $0x10] sm:$0xf0] %vm270_vm3, %v399_v37  ;;  %v268_v38 = vpop.permute.xlu0 %267 }
  0x92   : > { %271 = vst.msk [vmem:[#allocation2] sm:$0xf0] %vm270_vm3, %v268_v38 }
  0x94   : > { %v278_v39 = vpop.permute.xlu1 %277 }
  0x95   : > { %281 = vst.msk [vmem:[#allocation2] sm:$0xf0] %vm280_vm4, %v278_v39  ;;  %v240_v40 = vpop.permute.xlu0 %239 }
  0x96   : > { %243 = vst.msk [vmem:[#allocation2] sm:$0xf] %vm242_vm5, %v240_v40 }
  0x98   : > { %v335_v41 = vpop.permute.xlu1 %334 }
  0x99   : > { %337 = vst.msk [vmem:[#allocation2 + $0x8] sm:$0xf0] %vm270_vm3, %v335_v41  ;;  %v301_v42 = vpop.permute.xlu0 %300 }
  0x9a   : > { %303 = vst.msk [vmem:[#allocation2 + $0x8] sm:$0xf] %vm232_vm2, %v301_v42 }
  0x9c   : > { %v408_v43 = vpop.permute.xlu1 %407 }
  0x9d   : > { %410 = vst.msk [vmem:[#allocation2 + $0x10] sm:$0xf0] %vm280_vm4, %v408_v43  ;;  %v374_v44 = vpop.permute.xlu0 %373 }
  0x9e   : > { %376 = vst.msk [vmem:[#allocation2 + $0x10] sm:$0xf] %vm242_vm5, %v374_v44 }
  0xa0   : > { %v463_v45 = vpop.permute.xlu1 %462 }
  0xa1   : > { %465 = vst.msk [vmem:[#allocation2 + $0x18] sm:$0xf0] %vm270_vm3, %v463_v45  ;;  %v429_v46 = vpop.permute.xlu0 %428 }
  0xa2   : > { %431 = vst.msk [vmem:[#allocation2 + $0x18] sm:$0xf] %vm232_vm2, %v429_v46 }
  0xa4   : > { %v288_v47 = vpop.permute.xlu1 %287 }
  0xa5   : > { %291 = vst.msk [vmem:[#allocation2] sm:$0xf0] %vm290_vm6, %v288_v47  ;;  %v250_v48 = vpop.permute.xlu0 %249 }
  0xa6   : > { %253 = vst.msk [vmem:[#allocation2] sm:$0xf] %vm252_vm7, %v250_v48 }
  0xa8   : > { %v344_v49 = vpop.permute.xlu1 %343 }
  0xa9   : > { %346 = vst.msk [vmem:[#allocation2 + $0x8] sm:$0xf0] %vm280_vm4, %v344_v49  ;;  %v310_v50 = vpop.permute.xlu0 %309 }
  0xaa   : > { %312 = vst.msk [vmem:[#allocation2 + $0x8] sm:$0xf] %vm242_vm5, %v310_v50 }
  0xac   : > { %v417_v51 = vpop.permute.xlu1 %416 }
  0xad   : > { %419 = vst.msk [vmem:[#allocation2 + $0x10] sm:$0xf0] %vm290_vm6, %v417_v51  ;;  %v383_v52 = vpop.permute.xlu0 %382  ;;  %v484_v53 = vld [vmem:[#allocation2] sm:$0xff] }
  0xae   : > { %385 = vst.msk [vmem:[#allocation2 + $0x10] sm:$0xf] %vm252_vm7, %v383_v52  ;;  %896 = vmatprep.mubr.msk.bf16.mxu0 %vm519_vm8, %v484_v53 }
  0xb0   : > { %v472_v54 = vpop.permute.xlu1 %471 }
  0xb1   : > { %474 = vst.msk [vmem:[#allocation2 + $0x18] sm:$0xf0] %vm280_vm4, %v472_v54  ;;  %v438_v55 = vpop.permute.xlu0 %437 }
  0xb2   : > { %440 = vst.msk [vmem:[#allocation2 + $0x18] sm:$0xf] %vm242_vm5, %v438_v55 }
  0xb4   : > { %v353_v56 = vpop.permute.xlu1 %352 }
  0xb5   : > { %355 = vst.msk [vmem:[#allocation2 + $0x8] sm:$0xf0] %vm290_vm6, %v353_v56  ;;  %v319_v57 = vpop.permute.xlu0 %318  ;;  %v486_v58 = vld [vmem:[#allocation2 + $0x10] sm:$0xff] }
  0xb6   : > { %321 = vst.msk [vmem:[#allocation2 + $0x8] sm:$0xf] %vm252_vm7, %v319_v57  ;;  %900 = vmatprep.mubr.msk.bf16.mxu1 %vm519_vm8, %v486_v58 }
  0xb8   : > { %v481_v59 = vpop.permute.xlu1 %480 }
  0xb9   : > { %483 = vst.msk [vmem:[#allocation2 + $0x18] sm:$0xf0] %vm290_vm6, %v481_v59  ;;  %v447_v60 = vpop.permute.xlu0 %446 }
  0xba   : > { %449 = vst.msk [vmem:[#allocation2 + $0x18] sm:$0xf] %vm252_vm7, %v447_v60 }
  0xbd   : > { %v485_v61 = vld [vmem:[#allocation2 + $0x8] sm:$0xff] }
  0xbe   : > { %897 = vmatmul.mubr.msk.bf16.vlgmr.msra.gmra.mrb[0].mxu0 %vm519_vm8, %v485_v61 }
  0xc1   : > { %v487_v62 = vld [vmem:[#allocation2 + $0x18] sm:$0xff] }
  0xc2   : > { %901 = vmatmul.mubr.msk.bf16.vlgmr.msra.gmra.mrb[0].mxu1 %vm519_vm8, %v487_v62 }
 0x191   : > { %v898_v0 = vpop.f32.mrb[0].mxu0 }
 0x192   : > { %v575_v1 = vadd.f32 %v898_v0, %v829_v63  ;;  %v566_v2 = vpop.f32.mrb[1].mxu0 }
 0x193   : > { %v567_v3 = vadd.f32 %v829_v63, %v566_v2  ;;  %v899_v4 = vpop.f32.mrb[2].mxu0 }
 0x194   : > { %v578_v5 = vadd.f32 %v899_v4, %v829_v63  ;;  %v569_v6 = vpop.f32.mrb[3].mxu0  ;;  %v599_v9 = vmax.f32 %v575_v1, 0.0 }
 0x195   : > { %v570_v7 = vadd.f32 %v829_v63, %v569_v6  ;;  %v902_v8 = vpop.f32.mrb[0].mxu1  ;;  %v597_v13 = vmax.f32 %v567_v3, 0.0 }
 0x196   : > { %v600_v10 = vmax.f32 %v578_v5, 0.0  ;;  %v591_v11 = vadd.f32 %v902_v8, %v829_v63  ;;  %v582_v12 = vpop.f32.mrb[1].mxu1 }
 0x197   : > { %v598_v14 = vmax.f32 %v570_v7, 0.0  ;;  %v583_v15 = vadd.f32 %v829_v63, %v582_v12  ;;  %v903_v16 = vpop.f32.mrb[2].mxu1 }
 0x198   : > { %v868_v17 = vpack.c.bf16 %v600_v10, %v599_v9  ;;  %v594_v18 = vadd.f32 %v903_v16, %v829_v63  ;;  %v585_v19 = vpop.f32.mrb[3].mxu1  ;;  %v603_v22 = vmax.f32 %v591_v11, 0.0 }
 0x199   : > { %v863_v20 = vpack.c.bf16 %v598_v14, %v597_v13  ;;  %v586_v21 = vadd.f32 %v829_v63, %v585_v19  ;;  %v601_v24 = vmax.f32 %v583_v15, 0.0 }
 0x19a   : > { %880 = vst [vmem:[%s204_s27 + $0x8] sm:$0xff] %v868_v17   ;;  %v604_v23 = vmax.f32 %v594_v18, 0.0 }
 0x19b   : > { %864 = vst [vmem:[%s204_s27] sm:$0xff] %v863_v20   ;;  %v602_v25 = vmax.f32 %v586_v21, 0.0 }
 0x19c   : > { %v878_v26 = vpack.c.bf16 %v604_v23, %v603_v22 }
 0x19d   : > { %v873_v27 = vpack.c.bf16 %v602_v25, %v601_v24 }
 0x19e   : > { %882 = vst [vmem:[%s204_s27 + $0x18] sm:$0xff] %v878_v26  }
 0x19f   : > { %881 = vst [vmem:[%s204_s27 + $0x10] sm:$0xff] %v873_v27  }
 0x1a0   : > { %1014 = shalt.err (!%p1011_p5)
}
 0x1a1   : > { %s1015_s10 = scalar_lea.hbm %s1281_s5, 512  ;;  %s1019_s19 = scalar_lea.hbm %s1334_s3, 1024 }
 0x1a2   : > { %p1016_p6 = scmp.ne.s32.totalorder %s1281_s5, %s1015_s10  ;;  %p1020_p10 = scmp.lt.u32.totalorder %s1281_s5, %s1334_s3 }
 0x1a3   : > { %p1021_p11 = scmp.lt.u32.totalorder %s1019_s19, %s1015_s10  ;;  %p1023_p13 = scmp.lt.u32.totalorder %s1015_s10, %s1281_s5 }
 0x1a4   : > { %p1017_p7 = pnand %p1016_p6, %p1147_p4 }
 0x1a5   : > { %p1022_p12 = por %p1021_p11, %p1020_p10 }
 0x1a6   : > { %p1018_p9 = pneg %p1017_p7 }
 0x1a7   : > { %p1024_p0 = por %p1023_p13, %p1022_p12 }
 0x1a9   : > { %p1025_p1 = pnand %p1024_p0, %p1018_p9 }
 0x1ab   : > { %1028 = shalt.err (!%p1025_p1)
}
 0x1ac   : > { %s1085_s26 = smov 64   ;;  %s1086_s27 = smov 4  }
 0x1ad   : > { %910 = dma.vmem_to_hbm [thread:$0]  (%p1147_p4), %s1276_s28, 512, %s1281_s5, %s1285_s15, %s1085_s26, %s1085_s26, %s1086_s27  }
 0x1ae PF: > { %p916_p2 = scmp.ge.s32.totalorder %s1079_s17, 2  ;;  %s675_s29 = sand.u32 1, %s1059_s12  }
 0x1af   : > { %s676_s30 = scalar_lea.sflag [#allocation4], %s675_s29 }
 0x1b0   : > { %p913_p3 = pnand %p916_p2, %p1154_p8 }
 0x1b2   : > { %1054 = dma.done.wait (!%p913_p3), %s676_s30, 512  }
 0x1b3   : > { %1056 = vsyncadd (!%p913_p3), %s676_s30, 4294966784  ;;  %s16_s17 = sadd.s32 1, %s1079_s17   ;;  %s1337_s12 = smov %s1063_s13 }
 0x1b4   : > { %p13_p5 = scmp.ge.s32.totalorder %s16_s17, 4   ;;  %s1338_s13 = smov %s1067_s14 }
 0x1b5   : > { %s1339_s14 = smov %s1160_s25  ;;  %s1340_s15 = smov %s1075_s16 }
 0x1b6   : > { %s1341_s16 = smov %s1343_s20  ;;  %15 = sbr.rel (!%p13_p5) target bundleno = 4 (0x4), region = 104 }
 0x1bd   :  { %681 = vsyncpa [#allocation4], 1 }
 0x1be   :  { %683 = vsyncpa [#allocation4 + $0x1], 1 }

</bundles_post_ra>
